<compile_context>
chip_gen: v7x
topology: tpu7x:2x2x1
jax: 0.10.0
libtpu: 0.0.40
codegen_flags: <defaults>
</compile_context>

<pallas_src>
import functools
import math

import jax
import jax.numpy as jnp
from jax.experimental import pallas as pl
from jax.experimental.pallas import tpu as pltpu


_LANE = 128
_SUBLANE = 8


def _round_up(x: int, m: int) -> int:
    return ((x + m - 1) // m) * m


def _pick_divisor(dim: int, candidates) -> int:
    for c in candidates:
        if c <= dim and dim % c == 0:
            return c
    return dim


@functools.lru_cache(maxsize=None)
def _vmem_limits():
    """(physical_vmem_bytes, vmem_limit_bytes) for the current TPU generation."""
    cap = 64 * 1024 * 1024  # conservative fallback (fits every generation)
    try:
        cap = int(pltpu.get_tpu_info().vmem_capacity_bytes)
    except Exception:
        pass
    # v5e/v6e (128 MiB) -> ~96 MiB limit; v7x (64 MiB) -> 48 MiB limit.
    limit = min(int(cap * 0.75), 100 * 1024 * 1024)
    return cap, limit


# ---------------------------------------------------------------------------
# Fused whole-stack kernel: activations stay in VMEM across all layers.
# ---------------------------------------------------------------------------
def _fused_mlp_kernel(x_ref, *refs, n_layers):
    # refs = (w0, b0, w1, b1, ..., w_{L-1}, b_{L-1}, o_ref)
    o_ref = refs[-1]
    h = x_ref[...]                      # bf16 batch tile
    for li in range(n_layers):
        w = refs[2 * li][...]           # bf16, VMEM-resident across grid steps
        b = refs[2 * li + 1][...]       # f32
        y = jnp.dot(h, w, preferred_element_type=jnp.float32) + b
        if li != n_layers - 1:
            y = jnp.maximum(y, 0.0)
            h = y.astype(w.dtype)       # back to bf16 for the next MXU pass
        else:
            h = y
    o_ref[...] = h.astype(o_ref.dtype)


def _fused_vmem_estimate(tm, k0_pad, prepared_params, n_out_pad):
    """Estimated VMEM bytes incl. Pallas' default double-buffering."""
    est = 2 * tm * k0_pad * 2                       # x tile (bf16), 2 buffers
    est += 2 * tm * n_out_pad * 4                   # out tile (f32), 2 buffers
    for w, b in prepared_params:
        est += 2 * (w.size * w.dtype.itemsize + b.size * b.dtype.itemsize)
    widths = sorted((w.shape[1] for w, _ in prepared_params), reverse=True)
    widest = widths[0] + (widths[1] if len(widths) > 1 else 0)
    est += tm * widest * 6                          # live f32 + bf16 activations
    return est


def fused_mlp(x_pad, prepared_params, *, tm, vmem_limit_bytes):
    """Whole padded MLP stack as a single batch-gridded Pallas kernel."""
    B_pad, K0_pad = x_pad.shape
    n_layers = len(prepared_params)
    n_out = prepared_params[-1][0].shape[1]

    kernel = functools.partial(_fused_mlp_kernel, n_layers=n_layers)

    in_specs = [pl.BlockSpec((tm, K0_pad), lambda i: (i, 0))]
    flat_inputs = [x_pad]
    for w, b in prepared_params:
        # Constant block index: weights/biases stay resident across grid steps.
        in_specs.append(pl.BlockSpec(w.shape, lambda i: (0, 0)))
        in_specs.append(pl.BlockSpec(b.shape, lambda i: (0, 0)))
        flat_inputs.extend([w, b])

    return pl.pallas_call(
        kernel,
        out_shape=jax.ShapeDtypeStruct((B_pad, n_out), jnp.float32),
        grid=(B_pad // tm,),
        in_specs=in_specs,
        out_specs=pl.BlockSpec((tm, n_out), lambda i: (i, 0)),
        compiler_params=pltpu.CompilerParams(
            dimension_semantics=("parallel",),
            vmem_limit_bytes=int(vmem_limit_bytes),
        ),
    )(*flat_inputs)


# ---------------------------------------------------------------------------
# Tiled fallback for large layers: classic accumulator matmul.
# TODO(synk): replace the per-layer tiled fallback with a single
# weight-streaming kernel (activation resident in VMEM, weights streamed via
# pltpu.emit_pipeline) to remove inter-layer HBM round trips.
# ---------------------------------------------------------------------------
def _tiled_linear_kernel(x_ref, w_ref, b_ref, o_ref, acc_ref, *, apply_relu):
    k = pl.program_id(2)

    @pl.when(k == 0)
    def _():
        acc_ref[...] = jnp.zeros_like(acc_ref)

    acc_ref[...] += jnp.dot(x_ref[...], w_ref[...],
                            preferred_element_type=jnp.float32)

    @pl.when(k == pl.num_programs(2) - 1)
    def _():
        y = acc_ref[...] + b_ref[...]      # bias only in the finalize step
        if apply_relu:
            y = jnp.maximum(y, 0.0)
        o_ref[...] = y.astype(o_ref.dtype)


def _select_tiles(B, N, K, *, in_itemsize, out_itemsize, budget):
    tm = _pick_divisor(B, (512, 256, 128, 64, 32, 16, 8))
    tn = _pick_divisor(N, (1024, 512, 256, 128))
    tk = _pick_divisor(K, (1024, 512, 256, 128))
    # Single M tile: split N into >= 2 blocks so the "parallel" N axis can
    # feed both v7x TensorCores.
    if B // tm == 1 and N // tn == 1 and N >= 2 * _LANE:
        tn = _pick_divisor(N, tuple(c for c in (1024, 512, 256, 128)
                                    if c <= N // 2))

    def est(tm_, tn_, tk_):
        return (2 * (tm_ * tk_ + tk_ * tn_) * in_itemsize   # x + w tiles (2 bufs)
                + 2 * tn_ * 4                                # bias tile
                + 2 * tm_ * tn_ * out_itemsize               # out tile
                + tm_ * tn_ * 4)                             # f32 accumulator

    while est(tm, tn, tk) > budget and max(tn, tk) > _LANE:
        if tk >= tn:
            tk = max(_LANE, tk // 2)
        else:
            tn = max(_LANE, tn // 2)
    return tm, tn, tk


def tiled_linear(x, w, b, *, apply_relu, out_dtype, vmem_limit_bytes):
    """y = relu?(x @ w + b) with a pipelined, tiled accumulator matmul (bf16 in)."""
    B, K = x.shape
    Kw, N = w.shape
    assert K == Kw and b.shape == (1, N)

    tm, tn, tk = _select_tiles(
        B, N, K,
        in_itemsize=x.dtype.itemsize,
        out_itemsize=jnp.dtype(out_dtype).itemsize,
        budget=int(vmem_limit_bytes * 0.7),
    )
    grid = (B // tm, N // tn, K // tk)

    kernel = functools.partial(_tiled_linear_kernel, apply_relu=apply_relu)
    return pl.pallas_call(
        kernel,
        out_shape=jax.ShapeDtypeStruct((B, N), out_dtype),
        grid=grid,
        in_specs=[
            pl.BlockSpec((tm, tk), lambda i, j, k: (i, k)),
            pl.BlockSpec((tk, tn), lambda i, j, k: (k, j)),
            pl.BlockSpec((1, tn), lambda i, j, k: (0, j)),
        ],
        out_specs=pl.BlockSpec((tm, tn), lambda i, j, k: (i, j)),
        scratch_shapes=[pltpu.VMEM((tm, tn), jnp.float32)],
        compiler_params=pltpu.CompilerParams(
            dimension_semantics=("parallel", "parallel", "arbitrary"),
            vmem_limit_bytes=int(vmem_limit_bytes),
        ),
    )(x, w, b)


# ---------------------------------------------------------------------------
# Parameter init, one-time prepare (pad + bf16 cast), forward pass.
# ---------------------------------------------------------------------------
def init_fcn_params(key, input_shape, output_shape, hidden_sizes):
    """Mirror torch.nn.Linear default init (uniform +/- 1/sqrt(fan_in))."""
    input_size = int(math.prod(input_shape))
    output_size = int(math.prod(output_shape))
    sizes = [input_size] + list(hidden_sizes) + [output_size]
    params = []
    for i in range(len(sizes) - 1):
        fan_in, fan_out = sizes[i], sizes[i + 1]
        key, kw, kb = jax.random.split(key, 3)
        bound = 1.0 / math.sqrt(fan_in)
        w = jax.random.uniform(kw, (fan_in, fan_out), jnp.float32, -bound, bound)
        b = jax.random.uniform(kb, (1, fan_out), jnp.float32, -bound, bound)
        params.append((w, b))
    return params


def prepare_fcn_params(params, *, param_dtype=jnp.bfloat16):
    """One-time lane-dense zero-padding and bf16 cast of all (w, b) pairs."""
    prepared = []
    prev_real = params[0][0].shape[0]
    prev_pad = _round_up(prev_real, _LANE)
    for w, b in params:
        k_in, n_out = w.shape
        assert k_in == prev_real
        n_pad = _round_up(n_out, _LANE)
        w_pad = jnp.pad(w, ((0, prev_pad - k_in), (0, n_pad - n_out)))
        w_pad = w_pad.astype(param_dtype)
        b_pad = jnp.pad(b.reshape(1, -1), ((0, 0), (0, n_pad - n_out)))
        b_pad = b_pad.astype(jnp.float32)
        prepared.append((w_pad, b_pad))
        prev_real, prev_pad = n_out, n_pad
    return prepared


def fcn_forward(x_nchw, prepared_params, output_shape, *, force_tiled=False):
    """Forward pass of the FCN module. x_nchw: (B, C, H, W) float32."""
    B = x_nchw.shape[0]
    out_size = int(math.prod(output_shape))

    x_flat = x_nchw.reshape(B, -1)          # same ordering as torch .view(B, -1)
    K0 = x_flat.shape[1]
    K0_pad = prepared_params[0][0].shape[0]
    assert K0 <= K0_pad

    B_pad = max(_SUBLANE, _round_up(B, _SUBLANE))
    x_pad = jnp.pad(x_flat, ((0, B_pad - B), (0, K0_pad - K0)))
    x_pad = x_pad.astype(jnp.bfloat16)

    n_out_pad = prepared_params[-1][0].shape[1]
    _, vmem_limit = _vmem_limits()

    # Batch tile for the fused path: prefer >= 2 grid steps (pipelining +
    # v7x dual-TensorCore) when the padded batch allows it.
    tm_cands = (512, 256, 128, 64, 32, 16, 8)
    if B_pad >= 2 * _SUBLANE:
        tm = _pick_divisor(B_pad, tuple(c for c in tm_cands if c <= B_pad // 2))
    else:
        tm = B_pad

    fused_est = _fused_vmem_estimate(tm, K0_pad, prepared_params, n_out_pad)
    use_fused = (not force_tiled) and fused_est <= int(vmem_limit * 0.9)

    if use_fused:
        out_pad = fused_mlp(x_pad, prepared_params, tm=tm,
                            vmem_limit_bytes=vmem_limit)
    else:
        h = x_pad
        n_layers = len(prepared_params)
        for li, (w, b) in enumerate(prepared_params):
            last = li == n_layers - 1
            h = tiled_linear(
                h, w, b,
                apply_relu=not last,
                out_dtype=jnp.float32 if last else jnp.bfloat16,
                vmem_limit_bytes=vmem_limit,
            )
        out_pad = h

    out = out_pad[:B, :out_size].astype(jnp.float32)
    return out.reshape((B,) + tuple(output_shape))


if __name__ == "__main__":
    batch = 2
    input_shape = (4, 16, 16)   # -> 1024 flattened features
    output_shape = (8, 8)       # -> 64 outputs per sample
    hidden_sizes = (64, 32)

    key = jax.random.PRNGKey(0)
    key, kx = jax.random.split(key)
    x = jax.random.normal(kx, (batch,) + input_shape, dtype=jnp.float32)

    params = init_fcn_params(key, input_shape, output_shape, hidden_sizes)
    prepared = prepare_fcn_params(params)   # one-time pad + bf16 cast

    # Matched-precision pure-JAX reference (bf16 matmul inputs, f32 accumulate).
    h_ref = x.reshape(batch, -1)
    for li, (w, b) in enumerate(params):
        h_ref = jnp.dot(h_ref.astype(jnp.bfloat16), w.astype(jnp.bfloat16),
                        preferred_element_type=jnp.float32) + b
        if li != len(params) - 1:
            h_ref = jnp.maximum(h_ref, 0.0)
    ref = h_ref.reshape((batch,) + output_shape)

    # Fused single-kernel path (default for models that fit VMEM).
    fwd = jax.jit(functools.partial(fcn_forward, output_shape=output_shape))
    out = jax.block_until_ready(fwd(x, prepared))
    assert out.shape == (batch,) + output_shape, out.shape
    assert jnp.allclose(out, ref, atol=2e-2, rtol=2e-2), \
        float(jnp.max(jnp.abs(out - ref)))

    # Tiled accumulator path (used automatically when layers outgrow VMEM);
    # force it here so it is exercised too.
    fwd_tiled = jax.jit(functools.partial(
        fcn_forward, output_shape=output_shape, force_tiled=True))
    out_tiled = jax.block_until_ready(fwd_tiled(x, prepared))
    assert out_tiled.shape == (batch,) + output_shape, out_tiled.shape
    assert jnp.allclose(out_tiled, ref, atol=2e-2, rtol=2e-2), \
        float(jnp.max(jnp.abs(out_tiled - ref)))

    print("KERNEL_OK")
</pallas_src>

<mosaic_0001>
module attributes {stable_mosaic.version = 11 : i64} {
  func.func @_fused_mlp_kernel(%arg0: i32, %arg1: memref<8x1024xbf16, #tpu.memory_space<vmem>>, %arg2: memref<1024x128xbf16, #tpu.memory_space<vmem>>, %arg3: memref<1x128xf32, #tpu.memory_space<vmem>>, %arg4: memref<128x128xbf16, #tpu.memory_space<vmem>>, %arg5: memref<1x128xf32, #tpu.memory_space<vmem>>, %arg6: memref<128x128xbf16, #tpu.memory_space<vmem>>, %arg7: memref<1x128xf32, #tpu.memory_space<vmem>>, %arg8: memref<8x128xf32, #tpu.memory_space<vmem>>) attributes {dimension_semantics = [#tpu.dimension_semantics<parallel>], iteration_bounds = array<i64: 1>, scalar_prefetch = 0 : i64, scratch_operands = 0 : i64, tpu.core_type = #tpu.core_type<tc>, window_params = [{transform_indices = @transform_0, window_bounds = array<i64: 8, 1024>}, {pipeline_mode = #tpu.pipeline_mode<synchronous>, transform_indices = @transform_1, window_bounds = array<i64: 1024, 128>}, {pipeline_mode = #tpu.pipeline_mode<synchronous>, transform_indices = @transform_2, window_bounds = array<i64: 1, 128>}, {pipeline_mode = #tpu.pipeline_mode<synchronous>, transform_indices = @transform_3, window_bounds = array<i64: 128, 128>}, {pipeline_mode = #tpu.pipeline_mode<synchronous>, transform_indices = @transform_4, window_bounds = array<i64: 1, 128>}, {pipeline_mode = #tpu.pipeline_mode<synchronous>, transform_indices = @transform_5, window_bounds = array<i64: 128, 128>}, {pipeline_mode = #tpu.pipeline_mode<synchronous>, transform_indices = @transform_6, window_bounds = array<i64: 1, 128>}, {transform_indices = @transform_7, window_bounds = array<i64: 8, 128>}]} {
    %c0 = arith.constant 0 : index
    %c0_0 = arith.constant 0 : index
    %0 = vector.load %arg1[%c0, %c0_0] : memref<8x1024xbf16, #tpu.memory_space<vmem>>, vector<8x1024xbf16>
    %c0_1 = arith.constant 0 : index
    %c0_2 = arith.constant 0 : index
    %1 = vector.load %arg2[%c0_1, %c0_2] : memref<1024x128xbf16, #tpu.memory_space<vmem>>, vector<1024x128xbf16>
    %c0_3 = arith.constant 0 : index
    %c0_4 = arith.constant 0 : index
    %2 = vector.load %arg3[%c0_3, %c0_4] : memref<1x128xf32, #tpu.memory_space<vmem>>, vector<1x128xf32>
    %cst = arith.constant dense<0.000000e+00> : vector<8x128xf32>
    %3 = tpu.matmul %0, %1, %cst {dimension_numbers = #tpu.dot_dimension_numbers<[1], [0], [0], [1], [0, 0, 1, 1], [], []>} : vector<8x1024xbf16>, vector<1024x128xbf16>, vector<8x128xf32> -> vector<8x128xf32>
    %4 = vector.broadcast %2 : vector<1x128xf32> to vector<8x128xf32>
    %5 = arith.addf %3, %4 : vector<8x128xf32>
    %cst_5 = arith.constant 0.000000e+00 : f32
    %6 = vector.broadcast %cst_5 : f32 to vector<8x128xf32>
    %7 = arith.maximumf %5, %6 : vector<8x128xf32>
    %8 = arith.truncf %7 : vector<8x128xf32> to vector<8x128xbf16>
    %c0_6 = arith.constant 0 : index
    %c0_7 = arith.constant 0 : index
    %9 = vector.load %arg4[%c0_6, %c0_7] : memref<128x128xbf16, #tpu.memory_space<vmem>>, vector<128x128xbf16>
    %c0_8 = arith.constant 0 : index
    %c0_9 = arith.constant 0 : index
    %10 = vector.load %arg5[%c0_8, %c0_9] : memref<1x128xf32, #tpu.memory_space<vmem>>, vector<1x128xf32>
    %cst_10 = arith.constant dense<0.000000e+00> : vector<8x128xf32>
    %11 = tpu.matmul %8, %9, %cst_10 {dimension_numbers = #tpu.dot_dimension_numbers<[1], [0], [0], [1], [0, 0, 1, 1], [], []>} : vector<8x128xbf16>, vector<128x128xbf16>, vector<8x128xf32> -> vector<8x128xf32>
    %12 = vector.broadcast %10 : vector<1x128xf32> to vector<8x128xf32>
    %13 = arith.addf %11, %12 : vector<8x128xf32>
    %cst_11 = arith.constant 0.000000e+00 : f32
    %14 = vector.broadcast %cst_11 : f32 to vector<8x128xf32>
    %15 = arith.maximumf %13, %14 : vector<8x128xf32>
    %16 = arith.truncf %15 : vector<8x128xf32> to vector<8x128xbf16>
    %c0_12 = arith.constant 0 : index
    %c0_13 = arith.constant 0 : index
    %17 = vector.load %arg6[%c0_12, %c0_13] : memref<128x128xbf16, #tpu.memory_space<vmem>>, vector<128x128xbf16>
    %c0_14 = arith.constant 0 : index
    %c0_15 = arith.constant 0 : index
    %18 = vector.load %arg7[%c0_14, %c0_15] : memref<1x128xf32, #tpu.memory_space<vmem>>, vector<1x128xf32>
    %cst_16 = arith.constant dense<0.000000e+00> : vector<8x128xf32>
    %19 = tpu.matmul %16, %17, %cst_16 {dimension_numbers = #tpu.dot_dimension_numbers<[1], [0], [0], [1], [0, 0, 1, 1], [], []>} : vector<8x128xbf16>, vector<128x128xbf16>, vector<8x128xf32> -> vector<8x128xf32>
    %20 = vector.broadcast %18 : vector<1x128xf32> to vector<8x128xf32>
    %21 = arith.addf %19, %20 : vector<8x128xf32>
    %c0_17 = arith.constant 0 : index
    %c0_18 = arith.constant 0 : index
    %22 = vector.load %arg8[%c0_17, %c0_18] : memref<8x128xf32, #tpu.memory_space<vmem>>, vector<8x128xf32>
    tpu.vector_store %arg8[%c0_17, %c0_18], %21 {strides = array<i32>} : memref<8x128xf32, #tpu.memory_space<vmem>>, vector<8x128xf32>,
    return
  }
  func.func @transform_0(%arg0: i32) -> (i32, i32) {
    %c0_i32 = arith.constant 0 : i32
    %c0_i32_0 = arith.constant 0 : i32
    return %arg0, %c0_i32 : i32, i32
  }
  func.func @transform_1(%arg0: i32) -> (i32, i32) {
    %c0_i32 = arith.constant 0 : i32
    %c0_i32_0 = arith.constant 0 : i32
    %c0_i32_1 = arith.constant 0 : i32
    return %c0_i32, %c0_i32_0 : i32, i32
  }
  func.func @transform_2(%arg0: i32) -> (i32, i32) {
    %c0_i32 = arith.constant 0 : i32
    %c0_i32_0 = arith.constant 0 : i32
    %c0_i32_1 = arith.constant 0 : i32
    return %c0_i32, %c0_i32_0 : i32, i32
  }
  func.func @transform_3(%arg0: i32) -> (i32, i32) {
    %c0_i32 = arith.constant 0 : i32
    %c0_i32_0 = arith.constant 0 : i32
    %c0_i32_1 = arith.constant 0 : i32
    return %c0_i32, %c0_i32_0 : i32, i32
  }
  func.func @transform_4(%arg0: i32) -> (i32, i32) {
    %c0_i32 = arith.constant 0 : i32
    %c0_i32_0 = arith.constant 0 : i32
    %c0_i32_1 = arith.constant 0 : i32
    return %c0_i32, %c0_i32_0 : i32, i32
  }
  func.func @transform_5(%arg0: i32) -> (i32, i32) {
    %c0_i32 = arith.constant 0 : i32
    %c0_i32_0 = arith.constant 0 : i32
    %c0_i32_1 = arith.constant 0 : i32
    return %c0_i32, %c0_i32_0 : i32, i32
  }
  func.func @transform_6(%arg0: i32) -> (i32, i32) {
    %c0_i32 = arith.constant 0 : i32
    %c0_i32_0 = arith.constant 0 : i32
    %c0_i32_1 = arith.constant 0 : i32
    return %c0_i32, %c0_i32_0 : i32, i32
  }
  func.func @transform_7(%arg0: i32) -> (i32, i32) {
    %c0_i32 = arith.constant 0 : i32
    %c0_i32_0 = arith.constant 0 : i32
    return %arg0, %c0_i32 : i32, i32
  }
}

</mosaic_0001>

<bundles_post_ra>
// kernel: fcn_forward.1
= control target key start
LH: loop header
LB: loop body
LE: loop exit
PB: predicated region body
PF: predicated region fallthrough
CT: control target
= control target key end

     0   :  { %12 = vsyncpa [#allocation3], 0  ;;  %s1338_s24 = smov [#allocation2]   ;;  %s1485_s0 = inlined_call_operand.vmem [shape: bf16[8,1024], index: 0, kind: input, shape index: {}]   ;;  %s1486_s1 = inlined_call_operand.hbm [shape: bf16[1024,128], index: 1, kind: input, shape index: {}]   ;;  %s1487_s2 = inlined_call_operand.vmem [shape: f32[1,128], index: 2, kind: input, shape index: {}]   ;;  %s1488_s3 = inlined_call_operand.vmem [shape: bf16[128,128], index: 3, kind: input, shape index: {}]   ;;  %s1489_s4 = inlined_call_operand.vmem [shape: f32[1,128], index: 4, kind: input, shape index: {}]   ;;  %s1490_s5 = inlined_call_operand.vmem [shape: bf16[128,128], index: 5, kind: input, shape index: {}]   ;;  %s1491_s6 = inlined_call_operand.vmem [shape: f32[1,128], index: 6, kind: input, shape index: {}]   ;;  %s1492_s7 = inlined_call_operand.vmem [shape: f32[8,128], index: 7, kind: output, shape index: {}]  }
   0x1   :  { %s20_s25 = sshll.u32 %s1338_s24, 4  ;;  %s1314_s28 = scalar_lea.hbm %s1486_s1, 8192  ;;  %s21_s25 = int_to_ptr.vmem [resolvable:$true] %s20_s25 }
   0x2   :  { %p1315_p0 = scmp.ne.s32.totalorder %s1486_s1, %s1314_s28  ;;  %p1318_p1 = scmp.lt.u32.totalorder %s1314_s28, %s1486_s1 }
   0x4   :  { %p1320_p2 = pnand %p1318_p1, %p1315_p0 }
   0x6   :  { %1323 = shalt.err (!%p1320_p2)
}
   0x7   :  { %s1324_s10 = scalar_lea.vmem %s21_s25, 8192  ;;  %p1329_p4 = scmp.lt.s32.totalorder %s21_s25, %s21_s25 }
   0x8   :  { %p1325_p3 = scmp.ne.s32.totalorder %s21_s25, %s1324_s10  ;;  %p1330_p5 = scmp.lt.s32.totalorder %s1324_s10, %s1324_s10 }
   0xa   :  { %p1331_p6 = por %p1330_p5, %p1329_p4 }
   0xc   :  { %p1332_p7 = pnand %p1331_p6, %p1325_p3 }
   0xe   :  { %1335 = shalt.err (!%p1332_p7)
}
   0xf   :  { %s1339_s11 = smov 64   ;;  %s1340_s12 = smov 4  }
  0x10   :  { %26 = dma.hbm_to_vmem [thread:$0]  %s1486_s1, 8192, %s21_s25, [#allocation3], %s1339_s11, %s1339_s11, %s1340_s12  }
  0x11   :  { %1336 = dma.done.wait [#allocation3], 8192  }
  0x12   :  { %1337 = vsyncadd [#allocation3], 4294959104  ;;  %v1226_v0 = vld [vmem:[#allocation2 + $0x40] sm:$0xff]   ;;  %v1230_v4 = vld [vmem:[#allocation2 + $0x48] sm:$0xff]   ;;  %vm1342_vm0 = vmmov 0  }
  0x13   :  { %v1227_v1 = vld [vmem:[#allocation2 + $0xc0] sm:$0xff]   ;;  %1075 = vmatprep.subr.bf16.mxu0 %v1226_v0  ;;  %v1231_v5 = vld [vmem:[#allocation2 + $0xc8] sm:$0xff]   ;;  %v1234_v8 = vld [vmem:[#allocation2 + $0x50] sm:$0xff]  }
  0x14   :  { %v1228_v2 = vld [vmem:[#allocation2] sm:$0xff]   ;;  %1097 = vmatprep.subr.bf16.mxu1 %v1227_v1  ;;  %v1232_v6 = vld [vmem:[#allocation2 + $0x8] sm:$0xff]   ;;  %v1235_v9 = vld [vmem:[#allocation2 + $0xd0] sm:$0xff]  }
  0x15   :  { %v1229_v3 = vld [vmem:[#allocation2 + $0x80] sm:$0xff]   ;;  %1076 = vmatpush3.bf16.msra.mxu0 %v1228_v2  ;;  %v1233_v7 = vld [vmem:[#allocation2 + $0x88] sm:$0xff]   ;;  %v1236_v10 = vld [vmem:[#allocation2 + $0x10] sm:$0xff]  }
  0x16   :  { %1098 = vmatpush3.bf16.msra.mxu1 %v1229_v3  ;;  %1077 = vmatprep.subr.bf16.mxu0 %v1230_v4  ;;  %v1237_v11 = vld [vmem:[#allocation2 + $0x90] sm:$0xff]   ;;  %v1238_v12 = vld [vmem:[#allocation2 + $0x58] sm:$0xff]   ;;  %v1242_v16 = vld [vmem:[#allocation2 + $0x60] sm:$0xff]  }
  0x17   :  { %1099 = vmatprep.subr.bf16.mxu1 %v1231_v5  ;;  %v1239_v13 = vld [vmem:[#allocation2 + $0xd8] sm:$0xff]   ;;  %v1243_v17 = vld [vmem:[#allocation2 + $0xe0] sm:$0xff]   ;;  %v1246_v20 = vld [vmem:[#allocation2 + $0x68] sm:$0xff]  }
  0x18   :  { %v1240_v14 = vld [vmem:[#allocation2 + $0x18] sm:$0xff]   ;;  %v1244_v18 = vld [vmem:[#allocation2 + $0x20] sm:$0xff]   ;;  %v1247_v21 = vld [vmem:[#allocation2 + $0xe8] sm:$0xff]  }
  0x19   :  { %1078 = vmatpush3.bf16.msra.mxu0 %v1232_v6  ;;  %v1241_v15 = vld [vmem:[#allocation2 + $0x98] sm:$0xff]   ;;  %v1245_v19 = vld [vmem:[#allocation2 + $0xa0] sm:$0xff]   ;;  %v1248_v22 = vld [vmem:[#allocation2 + $0x28] sm:$0xff]  }
  0x1a   :  { %1100 = vmatpush3.bf16.msra.mxu1 %v1233_v7  ;;  %1079 = vmatprep.subr.bf16.mxu0 %v1234_v8  ;;  %v1249_v23 = vld [vmem:[#allocation2 + $0xa8] sm:$0xff]   ;;  %v1250_v24 = vld [vmem:[#allocation2 + $0x70] sm:$0xff]   ;;  %v1254_v28 = vld [vmem:[#allocation2 + $0x78] sm:$0xff]  }
  0x1b   :  { %1101 = vmatprep.subr.bf16.mxu1 %v1235_v9  ;;  %v1251_v25 = vld [vmem:[#allocation2 + $0xf0] sm:$0xff]   ;;  %v1255_v29 = vld [vmem:[#allocation2 + $0xf8] sm:$0xff]   ;;  %v41_v32 = vld [vmem:[%s1485_s0] sm:$0xff] }
  0x1c   :  { %v1252_v26 = vld [vmem:[#allocation2 + $0x30] sm:$0xff]   ;;  %v1256_v30 = vld [vmem:[#allocation2 + $0x38] sm:$0xff]   ;;  %v42_v33 = vld [vmem:[%s1485_s0 + $0x8] sm:$0xff]  ;;  %v985_v34 = vcombine.low %v41_v32, %v41_v32  ;;  %v986_v35 = vcombine.high %v41_v32, %v41_v32 }
  0x1d   :  { %1080 = vmatpush3.bf16.msra.mxu0 %v1236_v10  ;;  %v1253_v27 = vld [vmem:[#allocation2 + $0xb0] sm:$0xff]   ;;  %v1257_v31 = vld [vmem:[#allocation2 + $0xb8] sm:$0xff]   ;;  %v987_v36 = vcombine.low %v42_v33, %v42_v33  ;;  %v988_v37 = vcombine.high %v42_v33, %v42_v33  ;;  %v1262_v38 = vld [vmem:[#allocation2 + $0x140] sm:$0xff]  }
  0x1e   :  { %1102 = vmatpush3.bf16.msra.mxu1 %v1237_v11  ;;  %1081 = vmatprep.subr.bf16.mxu0 %v1238_v12  ;;  %v1263_v39 = vld [vmem:[#allocation2 + $0x1c0] sm:$0xff]   ;;  %v1266_v42 = vld [vmem:[#allocation2 + $0x148] sm:$0xff]   ;;  %v1270_v46 = vld [vmem:[#allocation2 + $0x150] sm:$0xff]  }
  0x1f   :  { %1103 = vmatprep.subr.bf16.mxu1 %v1239_v13  ;;  %624 = vmatprep.mubr.bf16.mxu0 %v986_v35  ;;  %v1264_v40 = vld [vmem:[#allocation2 + $0x100] sm:$0xff]   ;;  %v1267_v43 = vld [vmem:[#allocation2 + $0x1c8] sm:$0xff]   ;;  %v1271_v47 = vld [vmem:[#allocation2 + $0x1d0] sm:$0xff]   ;;  %v1341_v13 = vmov 0.0  }
  0x20   :  { %664 = vmatprep.mubr.bf16.mxu1 %v988_v37  ;;  %v1265_v41 = vld [vmem:[#allocation2 + $0x180] sm:$0xff]   ;;  %v1268_v44 = vld [vmem:[#allocation2 + $0x108] sm:$0xff]   ;;  %v1272_v48 = vld [vmem:[#allocation2 + $0x110] sm:$0xff]  }
  0x21   :  { %1082 = vmatpush3.bf16.msra.mxu0 %v1240_v14  ;;  %v1269_v45 = vld [vmem:[#allocation2 + $0x188] sm:$0xff]   ;;  %v1273_v49 = vld [vmem:[#allocation2 + $0x190] sm:$0xff]   ;;  %v1274_v50 = vld [vmem:[#allocation2 + $0x158] sm:$0xff]  }
  0x22   :  { %1104 = vmatpush3.bf16.msra.mxu1 %v1241_v15  ;;  %1083 = vmatprep.subr.bf16.mxu0 %v1242_v16  ;;  %v1275_v51 = vld [vmem:[#allocation2 + $0x1d8] sm:$0xff]   ;;  %v1278_v54 = vld [vmem:[#allocation2 + $0x160] sm:$0xff]   ;;  %v1282_v58 = vld [vmem:[#allocation2 + $0x168] sm:$0xff]  }
  0x23   :  { %1105 = vmatprep.subr.bf16.mxu1 %v1243_v17  ;;  %v1276_v52 = vld [vmem:[#allocation2 + $0x118] sm:$0xff]   ;;  %v1279_v55 = vld [vmem:[#allocation2 + $0x1e0] sm:$0xff]   ;;  %v1283_v59 = vld [vmem:[#allocation2 + $0x1e8] sm:$0xff]  }
  0x24   :  { %v1277_v53 = vld [vmem:[#allocation2 + $0x198] sm:$0xff]   ;;  %v1280_v56 = vld [vmem:[#allocation2 + $0x120] sm:$0xff]   ;;  %v1284_v60 = vld [vmem:[#allocation2 + $0x128] sm:$0xff]  }
  0x25   :  { %1084 = vmatpush3.bf16.msra.mxu0 %v1244_v18  ;;  %v1281_v57 = vld [vmem:[#allocation2 + $0x1a0] sm:$0xff]   ;;  %v1285_v61 = vld [vmem:[#allocation2 + $0x1a8] sm:$0xff]   ;;  %v1286_v62 = vld [vmem:[#allocation2 + $0x170] sm:$0xff]  }
  0x26   :  { %1106 = vmatpush3.bf16.msra.mxu1 %v1245_v19  ;;  %1085 = vmatprep.subr.bf16.mxu0 %v1246_v20  ;;  %v1287_v63 = vld [vmem:[#allocation2 + $0x1f0] sm:$0xff]   ;;  %v1290_v2 = vld [vmem:[#allocation2 + $0x178] sm:$0xff]   ;;  %v1298_v12 = vld [vmem:[%s1488_s3] sm:$0xff]  }
  0x27   :  { %1107 = vmatprep.subr.bf16.mxu1 %v1247_v21  ;;  %v1288_v0 = vld [vmem:[#allocation2 + $0x130] sm:$0xff]   ;;  %v1291_v3 = vld [vmem:[#allocation2 + $0x1f8] sm:$0xff]   ;;  %v1299_v14 = vld [vmem:[%s1488_s3 + $0x8] sm:$0xff]  }
  0x28   :  { %v1289_v1 = vld [vmem:[#allocation2 + $0x1b0] sm:$0xff]   ;;  %v1292_v4 = vld [vmem:[#allocation2 + $0x138] sm:$0xff]   ;;  %v1302_v17 = vld [vmem:[%s1488_s3 + $0x20] sm:$0xff]  }
  0x29   :  { %1086 = vmatpush3.bf16.msra.mxu0 %v1248_v22  ;;  %v1293_v5 = vld [vmem:[#allocation2 + $0x1b8] sm:$0xff]   ;;  %v43_v6 = vld [vmem:[%s1485_s0 + $0x10] sm:$0xff]  ;;  %v1303_v18 = vld [vmem:[%s1488_s3 + $0x28] sm:$0xff]  }
  0x2a   :  { %1108 = vmatpush3.bf16.msra.mxu1 %v1249_v23  ;;  %1087 = vmatprep.subr.bf16.mxu0 %v1250_v24  ;;  %v989_v7 = vcombine.low %v43_v6, %v43_v6  ;;  %v990_v8 = vcombine.high %v43_v6, %v43_v6  ;;  %v44_v9 = vld [vmem:[%s1485_s0 + $0x18] sm:$0xff]  ;;  %v1300_v15 = vld [vmem:[%s1488_s3 + $0x10] sm:$0xff]   ;;  %v1306_v21 = vld [vmem:[%s1490_s5] sm:$0xff]  }
  0x2b   :  { %1109 = vmatprep.subr.bf16.mxu1 %v1251_v25  ;;  %v991_v10 = vcombine.low %v44_v9, %v44_v9  ;;  %v992_v11 = vcombine.high %v44_v9, %v44_v9  ;;  %v1301_v16 = vld [vmem:[%s1488_s3 + $0x18] sm:$0xff]   ;;  %v1304_v19 = vld [vmem:[%s1488_s3 + $0x30] sm:$0xff]   ;;  %v1307_v22 = vld [vmem:[%s1490_s5 + $0x8] sm:$0xff]  }
  0x2c   :  { %v1305_v20 = vld [vmem:[%s1488_s3 + $0x38] sm:$0xff]   ;;  %v1308_v23 = vld [vmem:[%s1490_s5 + $0x10] sm:$0xff]   ;;  %v1310_v25 = vld [vmem:[%s1490_s5 + $0x20] sm:$0xff]  }
  0x2d   :  { %1088 = vmatpush3.bf16.msra.mxu0 %v1252_v26  ;;  %v1309_v24 = vld [vmem:[%s1490_s5 + $0x18] sm:$0xff]   ;;  %v1311_v26 = vld [vmem:[%s1490_s5 + $0x28] sm:$0xff]  }
  0x2e   :  { %1110 = vmatpush3.bf16.msra.mxu1 %v1253_v27  ;;  %1089 = vmatprep.subr.bf16.mxu0 %v1254_v28 }
  0x2f   :  { %1111 = vmatprep.subr.bf16.mxu1 %v1255_v29  ;;  %v984_v29 = vld [vmem:[%s1487_s2] ss:$0 sm:$0xff] }
  0x31   :  { %1090 = vmatpush3.bf16.msra.mxu0 %v1256_v30 }
  0x32   :  { %1112 = vmatpush3.bf16.msra.mxu1 %v1257_v31  ;;  %1119 = vmatprep.subr.bf16.mxu0 %v1262_v38 }
  0x33   :  { %1141 = vmatprep.subr.bf16.mxu1 %v1263_v39 }
  0x34   :  { %625 = vmatmul.mubr.bf16.vlgmr.msra.gmra.mrb[0].mxu0 %v985_v34 }
  0x35   :  { %665 = vmatmul.mubr.bf16.vlgmr.msra.gmra.mrb[0].mxu1 %v987_v36  ;;  %1120 = vmatpush3.bf16.msra.mxu0 %v1264_v40 }
  0x36   :  { %1142 = vmatpush3.bf16.msra.mxu1 %v1265_v41  ;;  %1121 = vmatprep.subr.bf16.mxu0 %v1266_v42 }
  0x37   :  { %1143 = vmatprep.subr.bf16.mxu1 %v1267_v43  ;;  %704 = vmatprep.mubr.bf16.mxu0 %v990_v8 }
  0x38   :  { %744 = vmatprep.mubr.bf16.mxu1 %v992_v11 }
  0x39   :  { %1122 = vmatpush3.bf16.msra.mxu0 %v1268_v44 }
  0x3a   :  { %1144 = vmatpush3.bf16.msra.mxu1 %v1269_v45  ;;  %1123 = vmatprep.subr.bf16.mxu0 %v1270_v46 }
  0x3b   :  { %1145 = vmatprep.subr.bf16.mxu1 %v1271_v47 }
  0x3d   :  { %1124 = vmatpush3.bf16.msra.mxu0 %v1272_v48 }
  0x3e   :  { %1146 = vmatpush3.bf16.msra.mxu1 %v1273_v49  ;;  %1125 = vmatprep.subr.bf16.mxu0 %v1274_v50 }
  0x3f   :  { %1147 = vmatprep.subr.bf16.mxu1 %v1275_v51 }
  0x41   :  { %1126 = vmatpush3.bf16.msra.mxu0 %v1276_v52 }
  0x42   :  { %1148 = vmatpush3.bf16.msra.mxu1 %v1277_v53  ;;  %1127 = vmatprep.subr.bf16.mxu0 %v1278_v54  ;;  %v1312_v54 = vld [vmem:[%s1490_s5 + $0x30] sm:$0xff]  }
  0x43   :  { %1149 = vmatprep.subr.bf16.mxu1 %v1279_v55  ;;  %v1313_v55 = vld [vmem:[%s1490_s5 + $0x38] sm:$0xff]  }
  0x45   :  { %1128 = vmatpush3.bf16.msra.mxu0 %v1280_v56  ;;  %v1057_v56 = vld [vmem:[%s1489_s4] ss:$0 sm:$0xff] }
  0x46   :  { %1150 = vmatpush3.bf16.msra.mxu1 %v1281_v57  ;;  %1129 = vmatprep.subr.bf16.mxu0 %v1282_v58 }
  0x47   :  { %1151 = vmatprep.subr.bf16.mxu1 %v1283_v59 }
  0x49   :  { %1130 = vmatpush3.bf16.msra.mxu0 %v1284_v60 }
  0x4a   :  { %1152 = vmatpush3.bf16.msra.mxu1 %v1285_v61  ;;  %1131 = vmatprep.subr.bf16.mxu0 %v1286_v62 }
  0x4b   :  { %1153 = vmatprep.subr.bf16.mxu1 %v1287_v63 }
  0x4d   :  { %1132 = vmatpush3.bf16.msra.mxu0 %v1288_v0  ;;  %v1066_v0 = vld [vmem:[%s1491_s6] ss:$0 sm:$0xff] }
  0x4e   :  { %1154 = vmatpush3.bf16.msra.mxu1 %v1289_v1  ;;  %1133 = vmatprep.subr.bf16.mxu0 %v1290_v2 }
  0x4f   :  { %1155 = vmatprep.subr.bf16.mxu1 %v1291_v3 }
  0x51   :  { %1134 = vmatpush3.bf16.msra.mxu0 %v1292_v4 }
  0x52   :  { %1156 = vmatpush3.bf16.msra.mxu1 %v1293_v5  ;;  %1181 = vmatprep.subr.bf16.mxu0 %v1341_v13 }
  0x53   :  { %1201 = vmatprep.subr.bf16.mxu1 %v1341_v13 }
  0x54   :  { %705 = vmatmul.mubr.bf16.vlgmr.msra.gmra.mrb[4].mxu0 %v989_v7 }
  0x55   :  { %745 = vmatmul.mubr.bf16.vlgmr.msra.gmra.mrb[4].mxu1 %v991_v10  ;;  %1182 = vmatpush3.bf16.msra.mxu0 %v1298_v12 }
  0x56   :  { %1183 = vmatprep.subr.bf16.mxu0 %v1341_v13  ;;  %1197 = vmatprep.mubr.msk.bf16.mxu0 %vm1342_vm0, %v1341_v13 }
  0x57   :  { %1217 = vmatprep.mubr.msk.bf16.mxu1 %vm1342_vm0, %v1341_v13  ;;  %1202 = vmatpush3.bf16.msra.mxu1 %v1306_v21 }
  0x58   :  { %1203 = vmatprep.subr.bf16.mxu1 %v1341_v13 }
  0x59   :  { %1184 = vmatpush3.bf16.msra.mxu0 %v1299_v14 }
  0x5a   :  { %1185 = vmatprep.subr.bf16.mxu0 %v1341_v13 }
  0x5b   :  { %1204 = vmatpush3.bf16.msra.mxu1 %v1307_v22 }
  0x5c   :  { %1205 = vmatprep.subr.bf16.mxu1 %v1341_v13 }
  0x5d   :  { %1186 = vmatpush3.bf16.msra.mxu0 %v1300_v15 }
  0x5e   :  { %1187 = vmatprep.subr.bf16.mxu0 %v1341_v13 }
  0x5f   :  { %1206 = vmatpush3.bf16.msra.mxu1 %v1308_v23 }
  0x60   :  { %1207 = vmatprep.subr.bf16.mxu1 %v1341_v13 }
  0x61   :  { %1188 = vmatpush3.bf16.msra.mxu0 %v1301_v16 }
  0x62   :  { %1189 = vmatprep.subr.bf16.mxu0 %v1341_v13 }
  0x63   :  { %1208 = vmatpush3.bf16.msra.mxu1 %v1309_v24 }
  0x64   :  { %1209 = vmatprep.subr.bf16.mxu1 %v1341_v13 }
  0x65   :  { %1190 = vmatpush3.bf16.msra.mxu0 %v1302_v17 }
  0x66   :  { %1191 = vmatprep.subr.bf16.mxu0 %v1341_v13 }
  0x67   :  { %1210 = vmatpush3.bf16.msra.mxu1 %v1310_v25 }
  0x68   :  { %1211 = vmatprep.subr.bf16.mxu1 %v1341_v13 }
  0x69   :  { %1192 = vmatpush3.bf16.msra.mxu0 %v1303_v18 }
  0x6a   :  { %1193 = vmatprep.subr.bf16.mxu0 %v1341_v13 }
  0x6b   :  { %1212 = vmatpush3.bf16.msra.mxu1 %v1311_v26 }
  0x6c   :  { %1213 = vmatprep.subr.bf16.mxu1 %v1341_v13 }
  0x6d   :  { %1194 = vmatpush3.bf16.msra.mxu0 %v1304_v19 }
  0x6e   :  { %1195 = vmatprep.subr.bf16.mxu0 %v1341_v13 }
  0x6f   :  { %1214 = vmatpush3.bf16.msra.mxu1 %v1312_v54 }
  0x70   :  { %1215 = vmatprep.subr.bf16.mxu1 %v1341_v13 }
  0x71   :  { %1196 = vmatpush3.bf16.msra.mxu0 %v1305_v20 }
  0x73   :  { %1216 = vmatpush3.bf16.msra.mxu1 %v1313_v55 }
 0x107   :  { %v1091_v27 = vpop.f32.mrb[0].mxu0 }
 0x108   :  { %v1113_v28 = vpop.f32.mrb[0].mxu1  ;;  %v1092_v30 = vpop.f32.mrb[1].mxu0 }
 0x109   :  { %v1114_v31 = vpop.f32.mrb[1].mxu1  ;;  %v1093_v32 = vadd.f32 %v1092_v30, %v1091_v27  ;;  %v1094_v34 = vpop.f32.mrb[2].mxu0 }
 0x10a   :  { %v1115_v33 = vadd.f32 %v1114_v31, %v1113_v28  ;;  %v1116_v35 = vpop.f32.mrb[2].mxu1  ;;  %v1095_v36 = vpop.f32.mrb[3].mxu0 }
 0x10b   :  { %v1117_v37 = vpop.f32.mrb[3].mxu1  ;;  %v627_v38 = vadd.f32 %v1093_v32, %v984_v29 }
 0x10d   :  { %v667_v39 = vadd.f32 %v1115_v33, %v627_v38 }
 0x127   :  { %v1135_v40 = vpop.f32.mrb[4].mxu0 }
 0x128   :  { %v1157_v41 = vpop.f32.mrb[4].mxu1  ;;  %v1136_v42 = vpop.f32.mrb[5].mxu0 }
 0x129   :  { %v1158_v43 = vpop.f32.mrb[5].mxu1  ;;  %v1137_v44 = vadd.f32 %v1136_v42, %v1135_v40  ;;  %v1138_v46 = vpop.f32.mrb[6].mxu0 }
 0x12a   :  { %v1159_v45 = vadd.f32 %v1158_v43, %v1157_v41  ;;  %v1160_v47 = vpop.f32.mrb[6].mxu1  ;;  %v1139_v48 = vpop.f32.mrb[7].mxu0 }
 0x12b   :  { %v1161_v49 = vpop.f32.mrb[7].mxu1  ;;  %v707_v50 = vadd.f32 %v1137_v44, %v667_v39 }
 0x12d   :  { %v747_v51 = vadd.f32 %v1159_v45, %v707_v50 }
 0x12f   :  { %v752_v52 = vmax.f32 %v747_v51, 0.0 }
 0x131   :  { %v753_v53 = vpack.c.bf16 %v752_v52, %v752_v52 }
 0x133   :  { %1198 = vmatmul.mubr.bf16.vlgmr.msra.gmra.mrb[8].mxu0 %v753_v53 }
 0x206   :  { %v859_v57 = vpop.f32.mrb[8].mxu0 }
 0x207   :  { %v860_v58 = vadd.f32 %v1057_v56, %v859_v57  ;;  %v1199_v59 = vpop.f32.mrb[9].mxu0 }
 0x208   :  { %v862_v60 = vpop.f32.mrb[10].mxu0 }
 0x209   :  { %v865_v61 = vmax.f32 %v860_v58, 0.0  ;;  %v1200_v62 = vpop.f32.mrb[11].mxu0 }
 0x20b   :  { %v866_v63 = vpack.c.bf16 %v865_v61, %v865_v61 }
 0x20d   :  { %1218 = vmatmul.mubr.bf16.vlgmr.msra.gmra.mrb[8].mxu1 %v866_v63 }
 0x2e0   :  { %v972_v1 = vpop.f32.mrb[8].mxu1 }
 0x2e1   :  { %v973_v2 = vadd.f32 %v1066_v0, %v972_v1  ;;  %v1219_v3 = vpop.f32.mrb[9].mxu1 }
 0x2e2   :  { %v975_v4 = vpop.f32.mrb[10].mxu1 }
 0x2e3   :  { %978 = vst [vmem:[%s1492_s7] sm:$0xff] %v973_v2  ;;  %v1220_v5 = vpop.f32.mrb[11].mxu1 }
 0x2e4   :  { %983 = vsyncpa [#allocation3], 1 }

</bundles_post_ra>
